<compile_context>
chip_gen: v7x
topology: tpu7x:2x2x1
jax: 0.10.0
libtpu: 0.0.40
codegen_flags: <defaults>
</compile_context>

<pallas_src>
import math

import jax
import jax.numpy as jnp
from jax import lax
from jax.experimental import pallas as pl
from jax.experimental.pallas import tpu as pltpu


def _vmem_limit(block_bytes):
    # Pallas double-buffers each tiled block; add headroom, clamp to be safe on v7x (64 MiB).
    need = 2 * int(block_bytes) + (4 << 20)
    return int(min(max(need, 16 << 20), 56 << 20))


# ---------------------------------------------------------------------------
# Kernel 1: modulated 3x3 conv (channel-first im2col) + InstanceNorm + scale/shift + lrelu
# ---------------------------------------------------------------------------
def _style_kernel(xcol_ref, w_ref, scale_ref, shift_ref, out_ref):
    # xcol  (1, 9C, HW)  channel-first im2col of the zero-padded input
    # w     (1, C, 9C)   per-batch modulated weight, contraction index = (ky*3+kx)*Cin+cin
    # scale/shift (1, C, 1)  channel affine with the FusedLeakyReLU sqrt(2) gain pre-folded
    # out   (1, C, HW)
    acc = jnp.dot(w_ref[0], xcol_ref[0], preferred_element_type=jnp.float32)   # (C, HW)

    # InstanceNorm2d (no affine, eps=1e-5, biased variance) -- two-pass stats for precision
    hw = acc.shape[-1]
    inv_n = jnp.float32(1.0 / hw)
    mean = jnp.sum(acc, axis=-1, keepdims=True) * inv_n                        # (C, 1)
    cen = acc - mean
    var = jnp.sum(cen * cen, axis=-1, keepdims=True) * inv_n
    z = cen * lax.rsqrt(var + 1e-5)

    # scale/shift already carry the sqrt(2) gain; only the leaky select remains
    z = z * scale_ref[0] + shift_ref[0]
    out_ref[0] = jnp.where(z >= 0.0, z, 0.2 * z).astype(out_ref.dtype)


def style_layer(xcol, w_cf, scale2_cf, shift_cf):
    B, K9, HW = xcol.shape
    C = w_cf.shape[1]
    blk_bytes = (K9 * HW + C * K9 + 2 * C + C * HW) * 4
    return pl.pallas_call(
        _style_kernel,
        out_shape=jax.ShapeDtypeStruct((B, C, HW), jnp.float32),
        grid_spec=pltpu.PrefetchScalarGridSpec(
            num_scalar_prefetch=0,
            grid=(B,),
            in_specs=[
                pl.BlockSpec((1, K9, HW), lambda b: (b, 0, 0)),
                pl.BlockSpec((1, C, K9), lambda b: (b, 0, 0)),
                pl.BlockSpec((1, C, 1), lambda b: (b, 0, 0)),
                pl.BlockSpec((1, C, 1), lambda b: (b, 0, 0)),
            ],
            out_specs=pl.BlockSpec((1, C, HW), lambda b: (b, 0, 0)),
        ),
        compiler_params=pltpu.CompilerParams(
            dimension_semantics=("parallel",),
            vmem_limit_bytes=_vmem_limit(blk_bytes),
        ),
    )(xcol, w_cf, scale2_cf, shift_cf)


# ---------------------------------------------------------------------------
# Kernel 2: collapsed imnet (single linear), channel-first, Q-tiled
# ---------------------------------------------------------------------------
def _query_kernel(qf_ref, rt_ref, wf_ref, out_ref):
    # qf (1, C, TQ) nearest-gathered feat, rt (C, TQ) rel-coord term (+bias), wf (C, C)
    out_ref[0] = (jnp.dot(wf_ref[...], qf_ref[0], preferred_element_type=jnp.float32)
                  + rt_ref[...]).astype(out_ref.dtype)


def inr_query(qf, rt, wf, *, tq):
    B, C, Qp = qf.shape
    blk_bytes = (3 * C * tq + C * C) * 4
    return pl.pallas_call(
        _query_kernel,
        out_shape=jax.ShapeDtypeStruct((B, C, Qp), jnp.float32),
        grid_spec=pltpu.PrefetchScalarGridSpec(
            num_scalar_prefetch=0,
            grid=(B, Qp // tq),
            in_specs=[
                pl.BlockSpec((1, C, tq), lambda b, q: (b, 0, q)),
                pl.BlockSpec((C, tq), lambda b, q: (0, q)),
                # weight: constant index_map -> fetched once, stays VMEM-resident
                pl.BlockSpec((C, C), lambda b, q: (0, 0)),
            ],
            out_specs=pl.BlockSpec((1, C, tq), lambda b, q: (b, 0, q)),
        ),
        compiler_params=pltpu.CompilerParams(
            dimension_semantics=("parallel", "parallel"),
            vmem_limit_bytes=_vmem_limit(blk_bytes),
        ),
    )(qf, rt, wf)


# ---------------------------------------------------------------------------
# Plain-JAX glue
# ---------------------------------------------------------------------------
def make_coord(shape):
    # LIIF make_coord: pixel-center coords in [-1, 1]; [:, 0] = dim -2 (y), [:, 1] = dim -1 (x)
    H, W = shape
    ys = -1.0 + (2.0 * jnp.arange(H, dtype=jnp.float32) + 1.0) / H
    xs = -1.0 + (2.0 * jnp.arange(W, dtype=jnp.float32) + 1.0) / W
    yy, xx = jnp.meshgrid(ys, xs, indexing="ij")
    return jnp.stack([yy, xx], axis=-1).reshape(-1, 2)


def modulated_weights(weight0, wmod, bmod, scale1, demodulate=True):
    # StyleGAN2 ModulatedConv2d weight preparation (per-batch) -> (B, Cout, 9*Cin)
    B = scale1.shape[0]
    Cout, Cin, k, _ = weight0.shape
    style = scale1 @ wmod.T + bmod                                    # (B, Cin)
    scale = 1.0 / math.sqrt(Cin * k * k)
    w = scale * weight0[None] * style[:, None, :, None, None]         # (B, Cout, Cin, k, k)
    if demodulate:
        demod = lax.rsqrt(jnp.sum(w * w, axis=(2, 3, 4)) + 1e-8)      # (B, Cout)
        w = w * demod[:, :, None, None, None]
    # contraction index = (ky*3+kx)*Cin + cin, matching the host-side im2col ordering
    return w.transpose(0, 1, 3, 4, 2).reshape(B, Cout, k * k * Cin)


def inr_sr_forward(params, x, out_shape, scale1, scale2, shift, *, tq=2048):
    B, C, H, W = x.shape
    oh, ow = out_shape
    Q = oh * ow
    HW = H * W
    sqrt2 = jnp.float32(math.sqrt(2.0))

    # ----- style layer (Pallas kernel 1): channel-first im2col, lane axis = H*W -----
    xpad = jnp.pad(x, ((0, 0), (0, 0), (1, 1), (1, 1)))               # (B, C, H+2, W+2)
    slabs = [lax.slice(xpad, (0, 0, ky, kx), (B, C, ky + H, kx + W))
             for ky in range(3) for kx in range(3)]                   # 9 x (B, C, H, W)
    xcol = jnp.concatenate(slabs, axis=1).reshape(B, 9 * C, HW)       # (B, 9C, HW)
    w_cf = modulated_weights(params["conv_w"], params["mod_w"], params["mod_b"], scale1)
    feat = style_layer(xcol, w_cf,
                       (scale2 * sqrt2)[:, :, None],                  # fold lrelu sqrt(2) gain
                       (shift * sqrt2)[:, :, None])                   # (B, C, H*W)

    # ----- nearest grid_sample indices + relative coords (batch-independent, tiny) -----
    coord = make_coord((oh, ow))                                      # (Q, 2)
    cy, cx = coord[:, 0], coord[:, 1]
    eps = 1e-6
    ccy = jnp.clip(cy, -1.0 + eps, 1.0 - eps)
    ccx = jnp.clip(cx, -1.0 + eps, 1.0 - eps)
    # grid_sample(mode='nearest', align_corners=False): unnormalize + round-half-to-even
    fy = ((ccy + 1.0) * H - 1.0) * 0.5
    fx = ((ccx + 1.0) * W - 1.0) * 0.5
    iy = jnp.clip(jnp.round(fy), 0.0, H - 1.0).astype(jnp.int32)      # (Q,)
    ix = jnp.clip(jnp.round(fx), 0.0, W - 1.0).astype(jnp.int32)
    flat = iy * W + ix                                                # (Q,)
    qy = -1.0 + (2.0 * iy.astype(jnp.float32) + 1.0) / H              # gathered feat_coord
    qx = -1.0 + (2.0 * ix.astype(jnp.float32) + 1.0) / W
    rel = jnp.stack([(cy - qy) * H, (cx - qx) * W], axis=0)           # (2, Q)

    # ----- collapse Linear(C+2,256)->Linear(256,C): no activation in the module -----
    Wfull = params["inr_w2"] @ params["inr_w1"]                       # (C, C+2)
    bc = params["inr_w2"] @ params["inr_b1"] + params["inr_b2"]       # (C,)
    wf = Wfull[:, :C]                                                 # (C, C)  feature part
    wr = Wfull[:, C:]                                                 # (C, 2)  rel-coord part
    rel_term = wr @ rel + bc[:, None]                                 # (C, Q) batch-independent

    # index-based nearest gather (XLA); indices shared across batch
    q_feat = jnp.take(feat, flat, axis=2)                             # (B, C, Q)

    # pad Q to a lane-aligned multiple of the query tile
    tq_eff = min(tq, ((Q + 127) // 128) * 128)
    Qpad = ((Q + tq_eff - 1) // tq_eff) * tq_eff
    if Qpad != Q:
        q_feat = jnp.pad(q_feat, ((0, 0), (0, 0), (0, Qpad - Q)))
        rel_term = jnp.pad(rel_term, ((0, 0), (0, Qpad - Q)))

    # ----- collapsed INR linear (Pallas kernel 2, Q-tiled, lane-dense) -----
    pred_cf = inr_query(q_feat, rel_term, wf, tq=tq_eff)              # (B, C, Qpad)

    # local_ensemble=False -> single branch, area/tot_area == 1; cell unused (cell_decode=False)
    return jnp.transpose(pred_cf[:, :, :Q], (0, 2, 1))                # (B, Q, C)


# ---------------------------------------------------------------------------
if __name__ == "__main__":
    key = jax.random.PRNGKey(0)
    dim = 4          # feature channels
    B, H, W = 2, 16, 16
    out_hw = (24, 24)
    S = 512          # num_style_feat
    keys = jax.random.split(key, 10)

    params = {
        "conv_w": jax.random.normal(keys[0], (dim, dim, 3, 3), jnp.float32),
        "mod_w": jax.random.normal(keys[1], (dim, S), jnp.float32) / math.sqrt(S),
        "mod_b": jnp.ones((dim,), jnp.float32),
        "inr_w1": jax.random.normal(keys[2], (256, dim + 2), jnp.float32) / math.sqrt(dim + 2),
        "inr_b1": 0.01 * jax.random.normal(keys[3], (256,), jnp.float32),
        "inr_w2": jax.random.normal(keys[4], (dim, 256), jnp.float32) / math.sqrt(256),
        "inr_b2": 0.01 * jax.random.normal(keys[5], (dim,), jnp.float32),
    }

    x = jax.random.normal(keys[6], (B, dim, H, W), jnp.float32)
    scale1 = jax.random.normal(keys[7], (B, S), jnp.float32)
    scale2 = 1.0 + 0.1 * jax.random.normal(keys[8], (B, dim), jnp.float32)
    shift = 0.1 * jax.random.normal(keys[9], (B, dim), jnp.float32)

    out = inr_sr_forward(params, x, out_hw, scale1, scale2, shift)
    out = jax.block_until_ready(out)
    assert out.shape == (B, out_hw[0] * out_hw[1], dim)
    assert bool(jnp.all(jnp.isfinite(out)))
    print("KERNEL_OK")
</pallas_src>

<mosaic_0001>
module attributes {stable_mosaic.version = 11 : i64} {
  func.func @_style_kernel(%arg0: i32, %arg1: memref<1x36x256xf32, #tpu.memory_space<vmem>>, %arg2: memref<1x4x36xf32, #tpu.memory_space<vmem>>, %arg3: memref<1x4x1xf32, #tpu.memory_space<vmem>>, %arg4: memref<1x4x1xf32, #tpu.memory_space<vmem>>, %arg5: memref<1x4x256xf32, #tpu.memory_space<vmem>>) attributes {dimension_semantics = [#tpu.dimension_semantics<parallel>], iteration_bounds = array<i64: 2>, scalar_prefetch = 0 : i64, scratch_operands = 0 : i64, tpu.core_type = #tpu.core_type<tc>, window_params = [{transform_indices = @transform_0, window_bounds = array<i64: 1, 36, 256>}, {transform_indices = @transform_1, window_bounds = array<i64: 1, 4, 36>}, {transform_indices = @transform_2, window_bounds = array<i64: 1, 4, 1>}, {transform_indices = @transform_3, window_bounds = array<i64: 1, 4, 1>}, {transform_indices = @transform_4, window_bounds = array<i64: 1, 4, 256>}]} {
    %c0 = arith.constant 0 : index
    %c0_0 = arith.constant 0 : index
    %c0_1 = arith.constant 0 : index
    %0 = vector.load %arg2[%c0, %c0_0, %c0_1] : memref<1x4x36xf32, #tpu.memory_space<vmem>>, vector<1x4x36xf32>
    %1 = vector.shape_cast %0 : vector<1x4x36xf32> to vector<4x36xf32>
    %c0_2 = arith.constant 0 : index
    %c0_3 = arith.constant 0 : index
    %c0_4 = arith.constant 0 : index
    %2 = vector.load %arg1[%c0_2, %c0_3, %c0_4] : memref<1x36x256xf32, #tpu.memory_space<vmem>>, vector<1x36x256xf32>
    %3 = vector.shape_cast %2 : vector<1x36x256xf32> to vector<36x256xf32>
    %cst = arith.constant dense<0.000000e+00> : vector<4x256xf32>
    %4 = tpu.matmul %1, %3, %cst {dimension_numbers = #tpu.dot_dimension_numbers<[1], [0], [0], [1], [0, 0, 1, 1], [], []>} : vector<4x36xf32>, vector<36x256xf32>, vector<4x256xf32> -> vector<4x256xf32>
    %cst_5 = arith.constant dense<0.000000e+00> : vector<4xf32>
    %5 = vector.multi_reduction <add>, %4, %cst_5 [1] : vector<4x256xf32> to vector<4xf32>
    %6 = vector.shape_cast %5 : vector<4xf32> to vector<4x1xf32>
    %cst_6 = arith.constant 3.906250e-03 : f32
    %7 = vector.broadcast %cst_6 : f32 to vector<4x1xf32>
    %8 = arith.mulf %6, %7 : vector<4x1xf32>
    %9 = vector.broadcast %8 : vector<4x1xf32> to vector<4x256xf32>
    %10 = arith.subf %4, %9 : vector<4x256xf32>
    %11 = arith.mulf %10, %10 : vector<4x256xf32>
    %cst_7 = arith.constant dense<0.000000e+00> : vector<4xf32>
    %12 = vector.multi_reduction <add>, %11, %cst_7 [1] : vector<4x256xf32> to vector<4xf32>
    %13 = vector.shape_cast %12 : vector<4xf32> to vector<4x1xf32>
    %cst_8 = arith.constant 3.906250e-03 : f32
    %14 = vector.broadcast %cst_8 : f32 to vector<4x1xf32>
    %15 = arith.mulf %13, %14 : vector<4x1xf32>
    %cst_9 = arith.constant 9.99999974E-6 : f32
    %16 = vector.broadcast %cst_9 : f32 to vector<4x1xf32>
    %17 = arith.addf %15, %16 : vector<4x1xf32>
    %18 = math.rsqrt %17 : vector<4x1xf32>
    %19 = vector.broadcast %18 : vector<4x1xf32> to vector<4x256xf32>
    %20 = arith.mulf %10, %19 : vector<4x256xf32>
    %c0_10 = arith.constant 0 : index
    %c0_11 = arith.constant 0 : index
    %c0_12 = arith.constant 0 : index
    %21 = vector.load %arg3[%c0_10, %c0_11, %c0_12] : memref<1x4x1xf32, #tpu.memory_space<vmem>>, vector<1x4x1xf32>
    %22 = vector.shape_cast %21 : vector<1x4x1xf32> to vector<4x1xf32>
    %23 = vector.broadcast %22 : vector<4x1xf32> to vector<4x256xf32>
    %24 = arith.mulf %20, %23 : vector<4x256xf32>
    %c0_13 = arith.constant 0 : index
    %c0_14 = arith.constant 0 : index
    %c0_15 = arith.constant 0 : index
    %25 = vector.load %arg4[%c0_13, %c0_14, %c0_15] : memref<1x4x1xf32, #tpu.memory_space<vmem>>, vector<1x4x1xf32>
    %26 = vector.shape_cast %25 : vector<1x4x1xf32> to vector<4x1xf32>
    %27 = vector.broadcast %26 : vector<4x1xf32> to vector<4x256xf32>
    %28 = arith.addf %24, %27 : vector<4x256xf32>
    %cst_16 = arith.constant 0.000000e+00 : f32
    %29 = vector.broadcast %cst_16 : f32 to vector<4x256xf32>
    %30 = arith.cmpf oge, %28, %29 : vector<4x256xf32>
    %cst_17 = arith.constant 2.000000e-01 : f32
    %31 = vector.broadcast %cst_17 : f32 to vector<4x256xf32>
    %32 = arith.mulf %31, %28 : vector<4x256xf32>
    %33 = arith.select %30, %28, %32 : vector<4x256xi1>, vector<4x256xf32>
    %c0_18 = arith.constant 0 : index
    %c0_19 = arith.constant 0 : index
    %c0_20 = arith.constant 0 : index
    %34 = vector.load %arg5[%c0_18, %c0_19, %c0_20] : memref<1x4x256xf32, #tpu.memory_space<vmem>>, vector<1x4x256xf32>
    %35 = vector.shape_cast %34 : vector<1x4x256xf32> to vector<4x256xf32>
    %36 = vector.shape_cast %33 : vector<4x256xf32> to vector<1x4x256xf32>
    tpu.vector_store %arg5[%c0_18, %c0_19, %c0_20], %36 {strides = array<i32>} : memref<1x4x256xf32, #tpu.memory_space<vmem>>, vector<1x4x256xf32>,
    return
  }
  func.func @transform_0(%arg0: i32) -> (i32, i32, i32) {
    %c0_i32 = arith.constant 0 : i32
    %c0_i32_0 = arith.constant 0 : i32
    %c0_i32_1 = arith.constant 0 : i32
    return %arg0, %c0_i32, %c0_i32_0 : i32, i32, i32
  }
  func.func @transform_1(%arg0: i32) -> (i32, i32, i32) {
    %c0_i32 = arith.constant 0 : i32
    %c0_i32_0 = arith.constant 0 : i32
    %c0_i32_1 = arith.constant 0 : i32
    return %arg0, %c0_i32, %c0_i32_0 : i32, i32, i32
  }
  func.func @transform_2(%arg0: i32) -> (i32, i32, i32) {
    %c0_i32 = arith.constant 0 : i32
    %c0_i32_0 = arith.constant 0 : i32
    %c0_i32_1 = arith.constant 0 : i32
    return %arg0, %c0_i32, %c0_i32_0 : i32, i32, i32
  }
  func.func @transform_3(%arg0: i32) -> (i32, i32, i32) {
    %c0_i32 = arith.constant 0 : i32
    %c0_i32_0 = arith.constant 0 : i32
    %c0_i32_1 = arith.constant 0 : i32
    return %arg0, %c0_i32, %c0_i32_0 : i32, i32, i32
  }
  func.func @transform_4(%arg0: i32) -> (i32, i32, i32) {
    %c0_i32 = arith.constant 0 : i32
    %c0_i32_0 = arith.constant 0 : i32
    %c0_i32_1 = arith.constant 0 : i32
    return %arg0, %c0_i32, %c0_i32_0 : i32, i32, i32
  }
}

</mosaic_0001>

<bundles_post_ra>
// kernel: tpu_custom_call.1
= control target key start
LH: loop header
LB: loop body
LE: loop exit
PB: predicated region body
PF: predicated region fallthrough
CT: control target
= control target key end

     0   :  { %9 = vsyncpa [#allocation3], 0  ;;  %s776_s0 = inlined_call_operand.vmem [shape: f32[2,36,256], index: 0, kind: input, shape index: {}]   ;;  %s777_s1 = inlined_call_operand.vmem [shape: f32[2,4,36], index: 1, kind: input, shape index: {}]   ;;  %s778_s2 = inlined_call_operand.vmem [shape: f32[2,4,1], index: 2, kind: input, shape index: {}]   ;;  %s779_s3 = inlined_call_operand.vmem [shape: f32[2,4,1], index: 3, kind: input, shape index: {}]   ;;  %s780_s4 = inlined_call_operand.hbm [shape: f32[2,4,256], index: 4, kind: output, shape index: {}]  }
   0x1   :  { %11 = vsyncpa [#allocation3 + $0x1], 0  ;;  %s661_s15 = smov 0   ;;  %s663_s16 = smov 0  }
   0x2   :  { %s665_s17 = smov 0   ;;  %s667_s18 = smov 0  }
   0x3 LB: > { %s682_s19 = sadd.s32 4294967295, %s631_s18   ;;  %s497_s20 = sadd.s32 4294967294, %s631_s18   ;;  %s631_s18 = sphi %s667_s18, %s786_s18   ;;  %s627_s17 = sphi %s665_s17, %s785_s17   ;;  %s623_s16 = sphi %s663_s16, %s784_s16   ;;  %s619_s15 = sphi %s661_s15, %s783_s15  }
   0x4   : > { %s686_s21 = sadd.s32 1, %s631_s18   ;;  %s128_s22 = sadd.s32 1, %s627_s17 }
   0x5   : > { %s125_s23 = ssub.s32 %s631_s18, %s686_s21  ;;  %p138_p0 = scmp.ne.s32.totalorder %s627_s17, %s623_s16 }
   0x6   : > { %p126_p1 = scmp.eq.s32.totalorder %s125_s23, 0  ;;  %p139_p2 = scmp.eq.s32.totalorder %s682_s19, 1 }
   0x7   : > { %p144_p3 = scmp.ne.s32.totalorder %s623_s16, %s619_s15  ;;  %p145_p4 = scmp.eq.s32.totalorder %s497_s20, 1 }
   0x8   : > { %s697_s24 = scalar_select %p126_p1, %s627_s17, %s128_s22  }
   0x9   : > { %p699_p5 = por %p139_p2, %p138_p0  ;;  %p703_p6 = por %p145_p4, %p144_p3 }
   0xa   : > { %p500_p7 = scmp.ge.s32.totalorder %s631_s18, 1  ;;  %p192_p8 = scmp.lt.s32.totalorder %s631_s18, 3 }
   0xc   : > { %p193_p9 = pnand %p500_p7, %p192_p8 }
   0xd   : > { %p230_p10 = scmp.lt.s32.totalorder (!%p193_p9), %s682_s19, 1  ;;  %v633_v0 = vmov (!%p193_p9), 0.0   ;;  %vm262_vm0 = vcmask (!%p193_p9), 1043456   ;;  %vm258_vm1 = vcmask (!%p193_p9), 293888   ;;  %v634_v21 = vmov (!%p193_p9), 0   ;;  %s227_s22 = sand.u32 (!%p193_p9), 1, %s623_s16  }
   0xe   : > { %196 = sbr.rel (%p193_p9) target bundleno = 588 (0x24c), region = 36  ;;  %333 = vmatprep.mubr.f32.mxu0 (!%p193_p9), %v633_v0  ;;  %565 = vset.pattern.permute.xlu1 (!%p193_p9), %v634_v21  ;;  %s501_s23 = sshll.u32 (!%p193_p9), %s227_s22, 3 }
   0xf   : > { %566 = vset.pattern.permute.xlu0 (!%p193_p9), %v634_v21  ;;  %s635_s8 = smov (!%p193_p9), [#allocation2]  }
  0x15   : > { %s231_s27 = scalar_select %p230_p10, %s682_s19, 1 }
  0x17   : > { %s523_s28 = smul.u32 80, %s231_s27  ;;  %s503_s6 = sshll.u32 %s231_s27, 2 }
  0x18   : > { %s238_s9 = scalar_lea.vmem %s777_s1, %s503_s6  ;;  %s242_s12 = scalar_lea.vmem %s778_s2, %s503_s6 }
  0x19   : > { %s234_s5 = scalar_lea.vmem %s776_s0, %s523_s28  ;;  %v247_v15 = vld [vmem:[%s238_s9] sm:$0xf]  ;;  %s246_s20 = scalar_lea.vmem %s779_s3, %s503_s6 }
  0x1a   : > { %v249_v1 = vld [vmem:[%s234_s5 + $0x8] sm:$0xff]  ;;  %v251_v2 = vld [vmem:[%s234_s5 + $0x18] sm:$0xff]  ;;  %v248_v3 = vld [vmem:[%s234_s5] sm:$0xff]  ;;  %s514_s27 = sshll.u32 %s682_s19, 7  ;;  %s229_s28 = scalar_lea.vmem [#allocation2], %s501_s23 }
  0x1b   : > { %v515_v4 = vpack.c.bf16 %v251_v2, %v249_v1  ;;  %v250_v5 = vld [vmem:[%s234_s5 + $0x10] sm:$0xff]  ;;  %v253_v6 = vld [vmem:[%s234_s5 + $0x28] sm:$0xff]  ;;  %v255_v7 = vld [vmem:[%s234_s5 + $0x38] sm:$0xff]  ;;  %s402_s29 = sshll.u32 %s229_s28, 4  ;;  %s734_s6 = scalar_lea.hbm %s780_s4, %s514_s27  ;;  %s736_s29 = int_to_ptr.vmem [resolvable:$true] %s402_s29 }
  0x1c   : > { %v517_v8 = vpack.c.bf16 %v250_v5, %v248_v3  ;;  %v519_v9 = vpack.c.bf16 %v255_v7, %v253_v6  ;;  %v252_v10 = vld [vmem:[%s234_s5 + $0x20] sm:$0xff]  ;;  %v254_v11 = vld [vmem:[%s234_s5 + $0x30] sm:$0xff]  ;;  %v257_v13 = vld [vmem:[%s234_s5 + $0x48] sm:$0xf]  ;;  %s388_s19 = scalar_lea.sflag [#allocation3], %s227_s22  ;;  %s569_s7 = scalar_lea.vmem %s736_s29, 128 }
  0x1d   : > { %516 = vmatprep.subr.bf16.mxu0 %v515_v4  ;;  %v521_v12 = vpack.c.bf16 %v254_v11, %v252_v10  ;;  %v256_v14 = vld [vmem:[%s234_s5 + $0x40] sm:$0xf]  ;;  %p570_p11 = scmp.ne.s32.totalorder %s736_s29, %s569_s7  ;;  %s573_s9 = sshll.u32 %s635_s8, 4  ;;  %s574_s9 = int_to_ptr.vmem [resolvable:$false] %s573_s9 }
  0x1e   : > { %518 = vmatpush1.bf16.msra.mxu0 %v517_v8  ;;  %v360_v22 = vld [vmem:[%s242_s12] sm:$0xf]  ;;  %s575_s10 = scalar_lea.vmem %s574_s9, 256  ;;  %p576_p0 = scmp.lt.s32.totalorder %s736_s29, %s574_s9 }
  0x1f   : > { %520 = vmatprep.subr.bf16.mxu0 %v519_v9  ;;  %363 = vperm.xlu1 %565, %v360_v22   ;;  %v368_v23 = vld [vmem:[%s246_s20] sm:$0xf]  ;;  %p571_p12 = pnand %p570_p11, %p699_p5  ;;  %p577_p1 = scmp.lt.s32.totalorder %s575_s10, %s569_s7 }
  0x21   : > { %p572_p13 = pneg %p571_p12  ;;  %p578_p2 = por %p577_p1, %p576_p0 }
  0x22   : > { %522 = vmatpush1.bf16.msra.mxu0 %v521_v12 }
  0x23   : > { %506 = vmatprep.subr.msk.mxu0 %vm262_vm0, %v257_v13  ;;  %371 = vperm.xlu1 %565, %v368_v23   ;;  %p579_p3 = pnand %p578_p2, %p572_p13 }
  0x26   : > { %507 = vmatpush1.msk.msra.mxu0 %vm262_vm0, %v256_v14 }
  0x27   : > { %508 = vmatmul.mubr.msk.f32.vlgmr.msra.gmra.mrb[0].mxu0 %vm258_vm1, %v247_v15 }
  0x9e   : > { %v364_v36 = vpop.permute.xlu1 %363 }
  0xa2   : > { %v372_v42 = vpop.permute.xlu1 %371 }
  0xfa   : > { %v335_v16 = vpop.f32.mrb[0].mxu0 }
  0xfb   : > { %v337_v17 = vpop.f32.mrb[1].mxu0  ;;  %v340_v18 = vsel %vm262_vm0, %v335_v16, 0.0 }
  0xfc   : > { %v341_v19 = vsel %vm262_vm0, %v337_v17, 0.0 }
  0xfd   : > { %v342_v20 = vadd.f32 %v341_v19, %v340_v18 }
  0xff   : > { %343 = vadd.xlane.f32.xlu0 %v342_v20 }
 0x18c   : > { %v344_v24 = vpop.xlane.xlu0 %343 }
 0x18d   : > { %v345_v25 = vmul.f32 0.00390625, %v344_v24 }
 0x18f   : > { %v346_v26 = vsub.f32 %v335_v16, %v345_v25  ;;  %v347_v27 = vsub.f32 %v337_v17, %v345_v25 }
 0x191   : > { %v348_v28 = vmul.f32 %v346_v26, %v346_v26  ;;  %v349_v29 = vmul.f32 %v347_v27, %v347_v27 }
 0x193   : > { %v350_v30 = vsel %vm262_vm0, %v348_v28, 0.0  ;;  %v351_v31 = vsel %vm262_vm0, %v349_v29, 0.0 }
 0x194   : > { %v352_v32 = vadd.f32 %v351_v31, %v350_v30 }
 0x196   : > { %353 = vadd.xlane.f32.xlu0 %v352_v32 }
 0x223   : > { %v354_v33 = vpop.xlane.xlu0 %353 }
 0x224   : > { %v355_v34 = vmul.f32 0.00390625, %v354_v33 }
 0x226   : > { %v356_v35 = vadd.f32 1e-05, %v355_v34 }
 0x228   : > { %567 = vrsqrt.f32 %v356_v35 }
 0x232   : > { %v568_v37 = vpop.eup %567 }
 0x233   : > { %v358_v38 = vmul.f32 %v568_v37, %v346_v26  ;;  %v359_v39 = vmul.f32 %v568_v37, %v347_v27 }
 0x235   : > { %v366_v40 = vmul.f32 %v364_v36, %v358_v38  ;;  %v367_v41 = vmul.f32 %v364_v36, %v359_v39 }
 0x237   : > { %v374_v43 = vadd.f32 %v372_v42, %v366_v40  ;;  %v375_v44 = vadd.f32 %v372_v42, %v367_v41 }
 0x239   : > { %vm376_vm2 = vcmp.ge.f32.partialorder %v374_v43, 0.0  ;;  %vm377_vm3 = vcmp.ge.f32.partialorder %v375_v44, 0.0  ;;  %v378_v45 = vmul.f32 0.2, %v374_v43  ;;  %v379_v46 = vmul.f32 0.2, %v375_v44 }
 0x23b   : > { %v380_v47 = vsel %vm376_vm2, %v374_v43, %v378_v45  ;;  %v381_v48 = vsel %vm377_vm3, %v375_v44, %v379_v46 }
 0x23c   : > { %v384_v49 = vcombine.low %v380_v47, %v381_v48 }
 0x23e   : > { %386 = vst [vmem:[%s229_s28] sm:$0xff] %v384_v49 }
 0x23f   : > { %582 = shalt.err (!%p579_p3)
}
 0x240   : > { %s583_s11 = scalar_lea.hbm %s734_s6, 128  ;;  %s587_s14 = scalar_lea.hbm %s780_s4, 256 }
 0x241   : > { %p584_p4 = scmp.ne.s32.totalorder %s734_s6, %s583_s11  ;;  %p588_p9 = scmp.lt.u32.totalorder %s734_s6, %s780_s4 }
 0x242   : > { %p589_p10 = scmp.lt.u32.totalorder %s587_s14, %s583_s11  ;;  %p591_p12 = scmp.lt.u32.totalorder %s583_s11, %s734_s6 }
 0x243   : > { %p585_p7 = pnand %p584_p4, %p699_p5 }
 0x244   : > { %p590_p11 = por %p589_p10, %p588_p9 }
 0x245   : > { %p586_p8 = pneg %p585_p7 }
 0x246   : > { %p592_p13 = por %p591_p12, %p590_p11 }
 0x248   : > { %p593_p0 = pnand %p592_p13, %p586_p8 }
 0x24a   : > { %596 = shalt.err (!%p593_p0)
}
 0x24b   : > { %524 = dma.vmem_to_hbm [thread:$0]  (%p699_p5), %s736_s29, 128, %s734_s6, %s388_s19  }
 0x24c PF: > { %p530_p1 = scmp.ge.s32.totalorder %s631_s18, 2  ;;  %s414_s23 = sand.u32 1, %s619_s15  }
 0x24d   : > { %s415_s27 = scalar_lea.sflag [#allocation3], %s414_s23 }
 0x24e   : > { %p527_p2 = pnand %p530_p1, %p703_p6 }
 0x250   : > { %614 = dma.done.wait (!%p527_p2), %s415_s27, 128  }
 0x251   : > { %616 = vsyncadd (!%p527_p2), %s415_s27, 4294967168  ;;  %p14_p3 = scmp.ge.s32.totalorder %s686_s21, 4   ;;  %s783_s15 = smov %s623_s16 }
 0x252   : > { %s784_s16 = smov %s627_s17  ;;  %s785_s17 = smov %s697_s24 }
 0x253   : > { %s786_s18 = smov %s686_s21  ;;  %16 = sbr.rel (!%p14_p3) target bundleno = 3 (0x3), region = 80 }
 0x25a   :  { %420 = vsyncpa [#allocation3], 1 }
 0x25b   :  { %422 = vsyncpa [#allocation3 + $0x1], 1 }

</bundles_post_ra>
